<compile_context>
chip_gen: v7x
topology: tpu7x:2x2x1
jax: 0.10.0
libtpu: 0.0.40
codegen_flags: <defaults>
</compile_context>

<pallas_src>
import functools

import jax
import jax.numpy as jnp
from jax.experimental import pallas as pl
from jax.experimental.pallas import tpu as pltpu

BN_EPS = 1e-5
F_IN = 11
H1, H2, H3 = 32, 64, 32
OUT_PAD = 128          # lane-dense padded width of the classifier output


# --------------------------------------------------------------------------
# Kernel
# --------------------------------------------------------------------------
def mlp_kernel(x_ref, w1_ref, w2_ref, w3_ref, w4_ref, bias_ref, o_ref):
    """Whole MLP forward for one (TILE_B, 11) batch tile.

    Each hidden layer is relu(x @ W' + b') with BN pre-folded into W'/b'.
    Dropout is identity at inference.  bf16 matmul operands, f32 accumulate.
    """
    def matmul(h, w_ref):
        return jnp.dot(h.astype(jnp.bfloat16), w_ref[...],
                       preferred_element_type=jnp.float32)

    biases = bias_ref[...]              # (4, 128) f32, zero-padded rows
    b1 = biases[0:1, 0:H1]
    b2 = biases[1:2, 0:H2]
    b3 = biases[2:3, 0:H3]
    b4 = biases[3:4, :]                 # full padded width (pad cols are 0)

    h = x_ref[...]
    h = jnp.maximum(matmul(h, w1_ref) + b1, 0.0)   # fc1 + bn1 + relu
    # Dropout(0.5) -> identity in eval mode
    h = jnp.maximum(matmul(h, w2_ref) + b2, 0.0)   # fc2 + bn2 + relu
    # Dropout(0.5) -> identity in eval mode
    h = jnp.maximum(matmul(h, w3_ref) + b3, 0.0)   # fc3 + bn3 + relu
    o_ref[...] = matmul(h, w4_ref) + b4            # fc4 (lane-dense 128 store)


# --------------------------------------------------------------------------
# Wrapper
# --------------------------------------------------------------------------
def _round_up(x, m):
    return (x + m - 1) // m * m


@functools.partial(jax.jit, static_argnames=("num_classes", "tile_b"))
def mlp_forward(x, folded, *, num_classes, tile_b=1024):
    """x: (B, 11) f32.  folded: (w1, w2, w3, w4_padded, bias_pack)."""
    w1, w2, w3, w4p, bias_pack = folded
    B = x.shape[0]

    tb = min(tile_b, _round_up(B, 8))          # batch tile (multiple of 8)
    b_pad = _round_up(B, tb)
    if b_pad != B:
        x = jnp.pad(x, ((0, b_pad - B), (0, 0)))
    grid = (b_pad // tb,)

    const = lambda i: (0, 0)                   # weights resident across steps
    out = pl.pallas_call(
        mlp_kernel,
        out_shape=jax.ShapeDtypeStruct((b_pad, OUT_PAD), jnp.float32),
        grid=grid,
        in_specs=[
            pl.BlockSpec((tb, F_IN), lambda i: (i, 0)),   # x tile
            pl.BlockSpec(w1.shape, const),
            pl.BlockSpec(w2.shape, const),
            pl.BlockSpec(w3.shape, const),
            pl.BlockSpec(w4p.shape, const),
            pl.BlockSpec(bias_pack.shape, const),
        ],
        out_specs=pl.BlockSpec((tb, OUT_PAD), lambda i: (i, 0)),
        compiler_params=pltpu.CompilerParams(
            dimension_semantics=("parallel",)),            # megacore on v7x
    )(x, w1, w2, w3, w4p, bias_pack)

    return out[:B, :num_classes]


# --------------------------------------------------------------------------
# Parameter construction (torch-style) + host-side BN fold
# --------------------------------------------------------------------------
def make_raw_params(key, num_classes):
    """Torch-layout params: W (out, in), plus BN stats for the first 3 layers."""
    dims = [(F_IN, H1), (H1, H2), (H2, H3), (H3, num_classes)]
    keys = jax.random.split(key, 6 * len(dims))
    raw = []
    for i, (fin, fout) in enumerate(dims):
        kw, kb, kg, kbe, km, kv = keys[6 * i:6 * i + 6]
        std = (2.0 / fin) ** 0.5                       # kaiming_normal (fan_in, relu)
        w = jax.random.normal(kw, (fout, fin), jnp.float32) * std
        bound = 1.0 / (fin ** 0.5)
        b = jax.random.uniform(kb, (fout,), minval=-bound, maxval=bound,
                               dtype=jnp.float32)
        layer = {"w": w, "b": b}
        if i < 3:                                      # BN after fc1/fc2/fc3
            layer["gamma"] = jax.random.uniform(kg, (fout,), minval=0.5,
                                                maxval=1.5, dtype=jnp.float32)
            layer["beta"] = jax.random.normal(kbe, (fout,), jnp.float32) * 0.1
            layer["mean"] = jax.random.normal(km, (fout,), jnp.float32) * 0.1
            layer["var"] = jax.random.uniform(kv, (fout,), minval=0.5,
                                              maxval=1.5, dtype=jnp.float32)
        raw.append(layer)
    return raw


def fold_params(raw, num_classes):
    """Fold eval-mode BN into W/b, transpose to (in, out), pad classifier to
    128 lanes, pack biases into one (4, 128) operand, cast weights to bf16."""
    ws, bs = [], []
    for layer in raw:
        w_t = layer["w"].T                             # (in, out)
        b = layer["b"]
        if "gamma" in layer:
            scale = layer["gamma"] * jax.lax.rsqrt(layer["var"] + BN_EPS)
            shift = layer["beta"] - layer["mean"] * scale
            w_t = w_t * scale[None, :]
            b = b * scale + shift
        ws.append(w_t)
        bs.append(b)

    w4p = jnp.pad(ws[3], ((0, 0), (0, OUT_PAD - num_classes)))

    bias_pack = jnp.zeros((4, OUT_PAD), jnp.float32)
    bias_pack = bias_pack.at[0, :H1].set(bs[0])
    bias_pack = bias_pack.at[1, :H2].set(bs[1])
    bias_pack = bias_pack.at[2, :H3].set(bs[2])
    bias_pack = bias_pack.at[3, :num_classes].set(bs[3])

    w_bf16 = tuple(w.astype(jnp.bfloat16) for w in (ws[0], ws[1], ws[2], w4p))
    return (*w_bf16, bias_pack)


# --------------------------------------------------------------------------
# Pure-JAX reference (f32, eval-mode BN, dropout = identity)
# --------------------------------------------------------------------------
def mlp_reference(x, raw):
    h = x
    for layer in raw:
        h = h @ layer["w"].T + layer["b"]
        if "gamma" in layer:
            h = ((h - layer["mean"]) * jax.lax.rsqrt(layer["var"] + BN_EPS)
                 * layer["gamma"] + layer["beta"])
            h = jnp.maximum(h, 0.0)
    return h


# TODO(synk): training-mode Dropout (RNG mask) and batch-stat BatchNorm are not
# implemented; the kernel implements inference (eval) semantics only.

if __name__ == "__main__":
    num_classes = 10
    batch = 8

    key = jax.random.PRNGKey(0)
    k_x, k_p = jax.random.split(key)
    x = jax.random.normal(k_x, (batch, F_IN), dtype=jnp.float32)

    raw = make_raw_params(k_p, num_classes)
    folded = fold_params(raw, num_classes)

    out = mlp_forward(x, folded, num_classes=num_classes)
    out = jax.block_until_ready(out)

    ref = mlp_reference(x, raw)
    assert out.shape == (batch, num_classes)
    # bf16 matmul operands (f32 accumulate) -> loosened tolerance vs f32 ref.
    assert jnp.allclose(out, ref, atol=5e-2, rtol=5e-2), \
        float(jnp.max(jnp.abs(out - ref)))

    print("KERNEL_OK")
</pallas_src>

<mosaic_0001>
module attributes {stable_mosaic.version = 11 : i64} {
  func.func @mlp_kernel(%arg0: i32, %arg1: memref<8x11xf32, #tpu.memory_space<vmem>>, %arg2: memref<11x32xbf16, #tpu.memory_space<vmem>>, %arg3: memref<32x64xbf16, #tpu.memory_space<vmem>>, %arg4: memref<64x32xbf16, #tpu.memory_space<vmem>>, %arg5: memref<32x128xbf16, #tpu.memory_space<vmem>>, %arg6: memref<4x128xf32, #tpu.memory_space<vmem>>, %arg7: memref<8x128xf32, #tpu.memory_space<vmem>>) attributes {dimension_semantics = [#tpu.dimension_semantics<parallel>], iteration_bounds = array<i64: 1>, scalar_prefetch = 0 : i64, scratch_operands = 0 : i64, tpu.core_type = #tpu.core_type<tc>, window_params = [{transform_indices = @transform_0, window_bounds = array<i64: 8, 11>}, {pipeline_mode = #tpu.pipeline_mode<synchronous>, transform_indices = @transform_1, window_bounds = array<i64: 11, 32>}, {pipeline_mode = #tpu.pipeline_mode<synchronous>, transform_indices = @transform_2, window_bounds = array<i64: 32, 64>}, {pipeline_mode = #tpu.pipeline_mode<synchronous>, transform_indices = @transform_3, window_bounds = array<i64: 64, 32>}, {pipeline_mode = #tpu.pipeline_mode<synchronous>, transform_indices = @transform_4, window_bounds = array<i64: 32, 128>}, {pipeline_mode = #tpu.pipeline_mode<synchronous>, transform_indices = @transform_5, window_bounds = array<i64: 4, 128>}, {transform_indices = @transform_6, window_bounds = array<i64: 8, 128>}]} {
    %c0 = arith.constant 0 : index
    %c0_0 = arith.constant 0 : index
    %0 = vector.load %arg6[%c0, %c0_0] : memref<4x128xf32, #tpu.memory_space<vmem>>, vector<4x128xf32>
    %1 = vector.extract_strided_slice %0 {offsets = [0, 0], sizes = [1, 32], strides = [1, 1]} : vector<4x128xf32> to vector<1x32xf32>
    %2 = vector.extract_strided_slice %0 {offsets = [1, 0], sizes = [1, 64], strides = [1, 1]} : vector<4x128xf32> to vector<1x64xf32>
    %3 = vector.extract_strided_slice %0 {offsets = [2, 0], sizes = [1, 32], strides = [1, 1]} : vector<4x128xf32> to vector<1x32xf32>
    %4 = vector.extract_strided_slice %0 {offsets = [3, 0], sizes = [1, 128], strides = [1, 1]} : vector<4x128xf32> to vector<1x128xf32>
    %c0_1 = arith.constant 0 : index
    %c0_2 = arith.constant 0 : index
    %5 = vector.load %arg1[%c0_1, %c0_2] : memref<8x11xf32, #tpu.memory_space<vmem>>, vector<8x11xf32>
    %6 = arith.truncf %5 : vector<8x11xf32> to vector<8x11xbf16>
    %c0_3 = arith.constant 0 : index
    %c0_4 = arith.constant 0 : index
    %7 = vector.load %arg2[%c0_3, %c0_4] : memref<11x32xbf16, #tpu.memory_space<vmem>>, vector<11x32xbf16>
    %cst = arith.constant dense<0.000000e+00> : vector<8x32xf32>
    %8 = tpu.matmul %6, %7, %cst {dimension_numbers = #tpu.dot_dimension_numbers<[1], [0], [0], [1], [0, 0, 1, 1], [], []>} : vector<8x11xbf16>, vector<11x32xbf16>, vector<8x32xf32> -> vector<8x32xf32>
    %9 = vector.broadcast %1 : vector<1x32xf32> to vector<8x32xf32>
    %10 = arith.addf %8, %9 : vector<8x32xf32>
    %cst_5 = arith.constant 0.000000e+00 : f32
    %11 = vector.broadcast %cst_5 : f32 to vector<8x32xf32>
    %12 = arith.maximumf %10, %11 : vector<8x32xf32>
    %13 = arith.truncf %12 : vector<8x32xf32> to vector<8x32xbf16>
    %c0_6 = arith.constant 0 : index
    %c0_7 = arith.constant 0 : index
    %14 = vector.load %arg3[%c0_6, %c0_7] : memref<32x64xbf16, #tpu.memory_space<vmem>>, vector<32x64xbf16>
    %cst_8 = arith.constant dense<0.000000e+00> : vector<8x64xf32>
    %15 = tpu.matmul %13, %14, %cst_8 {dimension_numbers = #tpu.dot_dimension_numbers<[1], [0], [0], [1], [0, 0, 1, 1], [], []>} : vector<8x32xbf16>, vector<32x64xbf16>, vector<8x64xf32> -> vector<8x64xf32>
    %16 = vector.broadcast %2 : vector<1x64xf32> to vector<8x64xf32>
    %17 = arith.addf %15, %16 : vector<8x64xf32>
    %cst_9 = arith.constant 0.000000e+00 : f32
    %18 = vector.broadcast %cst_9 : f32 to vector<8x64xf32>
    %19 = arith.maximumf %17, %18 : vector<8x64xf32>
    %20 = arith.truncf %19 : vector<8x64xf32> to vector<8x64xbf16>
    %c0_10 = arith.constant 0 : index
    %c0_11 = arith.constant 0 : index
    %21 = vector.load %arg4[%c0_10, %c0_11] : memref<64x32xbf16, #tpu.memory_space<vmem>>, vector<64x32xbf16>
    %cst_12 = arith.constant dense<0.000000e+00> : vector<8x32xf32>
    %22 = tpu.matmul %20, %21, %cst_12 {dimension_numbers = #tpu.dot_dimension_numbers<[1], [0], [0], [1], [0, 0, 1, 1], [], []>} : vector<8x64xbf16>, vector<64x32xbf16>, vector<8x32xf32> -> vector<8x32xf32>
    %23 = vector.broadcast %3 : vector<1x32xf32> to vector<8x32xf32>
    %24 = arith.addf %22, %23 : vector<8x32xf32>
    %cst_13 = arith.constant 0.000000e+00 : f32
    %25 = vector.broadcast %cst_13 : f32 to vector<8x32xf32>
    %26 = arith.maximumf %24, %25 : vector<8x32xf32>
    %27 = arith.truncf %26 : vector<8x32xf32> to vector<8x32xbf16>
    %c0_14 = arith.constant 0 : index
    %c0_15 = arith.constant 0 : index
    %28 = vector.load %arg5[%c0_14, %c0_15] : memref<32x128xbf16, #tpu.memory_space<vmem>>, vector<32x128xbf16>
    %cst_16 = arith.constant dense<0.000000e+00> : vector<8x128xf32>
    %29 = tpu.matmul %27, %28, %cst_16 {dimension_numbers = #tpu.dot_dimension_numbers<[1], [0], [0], [1], [0, 0, 1, 1], [], []>} : vector<8x32xbf16>, vector<32x128xbf16>, vector<8x128xf32> -> vector<8x128xf32>
    %30 = vector.broadcast %4 : vector<1x128xf32> to vector<8x128xf32>
    %31 = arith.addf %29, %30 : vector<8x128xf32>
    %c0_17 = arith.constant 0 : index
    %c0_18 = arith.constant 0 : index
    %32 = vector.load %arg7[%c0_17, %c0_18] : memref<8x128xf32, #tpu.memory_space<vmem>>, vector<8x128xf32>
    tpu.vector_store %arg7[%c0_17, %c0_18], %31 {strides = array<i32>} : memref<8x128xf32, #tpu.memory_space<vmem>>, vector<8x128xf32>,
    return
  }
  func.func @transform_0(%arg0: i32) -> (i32, i32) {
    %c0_i32 = arith.constant 0 : i32
    %c0_i32_0 = arith.constant 0 : i32
    return %arg0, %c0_i32 : i32, i32
  }
  func.func @transform_1(%arg0: i32) -> (i32, i32) {
    %c0_i32 = arith.constant 0 : i32
    %c0_i32_0 = arith.constant 0 : i32
    %c0_i32_1 = arith.constant 0 : i32
    return %c0_i32, %c0_i32_0 : i32, i32
  }
  func.func @transform_2(%arg0: i32) -> (i32, i32) {
    %c0_i32 = arith.constant 0 : i32
    %c0_i32_0 = arith.constant 0 : i32
    %c0_i32_1 = arith.constant 0 : i32
    return %c0_i32, %c0_i32_0 : i32, i32
  }
  func.func @transform_3(%arg0: i32) -> (i32, i32) {
    %c0_i32 = arith.constant 0 : i32
    %c0_i32_0 = arith.constant 0 : i32
    %c0_i32_1 = arith.constant 0 : i32
    return %c0_i32, %c0_i32_0 : i32, i32
  }
  func.func @transform_4(%arg0: i32) -> (i32, i32) {
    %c0_i32 = arith.constant 0 : i32
    %c0_i32_0 = arith.constant 0 : i32
    %c0_i32_1 = arith.constant 0 : i32
    return %c0_i32, %c0_i32_0 : i32, i32
  }
  func.func @transform_5(%arg0: i32) -> (i32, i32) {
    %c0_i32 = arith.constant 0 : i32
    %c0_i32_0 = arith.constant 0 : i32
    %c0_i32_1 = arith.constant 0 : i32
    return %c0_i32, %c0_i32_0 : i32, i32
  }
  func.func @transform_6(%arg0: i32) -> (i32, i32) {
    %c0_i32 = arith.constant 0 : i32
    %c0_i32_0 = arith.constant 0 : i32
    return %arg0, %c0_i32 : i32, i32
  }
}

</mosaic_0001>

<bundles_post_ra>
// kernel: mlp_forward.1
= control target key start
LH: loop header
LB: loop body
LE: loop exit
PB: predicated region body
PF: predicated region fallthrough
CT: control target
= control target key end

     0   :  { %vm43_vm0 = vcmask 1044480   ;;  %v415_v0 = vmov 0.0   ;;  %vm44_vm1 = vcmask 1045504   ;;  %v416_v2 = vmov 65535   ;;  %s505_s0 = inlined_call_operand.vmem [shape: f32[8,11], index: 0, kind: input, shape index: {}]   ;;  %s506_s1 = inlined_call_operand.vmem [shape: bf16[11,32], index: 1, kind: input, shape index: {}]   ;;  %s507_s2 = inlined_call_operand.vmem [shape: bf16[32,64], index: 2, kind: input, shape index: {}]   ;;  %s508_s3 = inlined_call_operand.vmem [shape: bf16[64,32], index: 3, kind: input, shape index: {}]   ;;  %s509_s4 = inlined_call_operand.vmem [shape: bf16[32,128], index: 4, kind: input, shape index: {}]   ;;  %s510_s5 = inlined_call_operand.vmem [shape: f32[4,128], index: 5, kind: input, shape index: {}]   ;;  %s511_s6 = inlined_call_operand.hbm [shape: f32[8,128], index: 6, kind: output, shape index: {}]  }
   0x1   :  { %344 = vmatprep.subr.bf16.mxu0 %v415_v0  ;;  %v382_v1 = vld [vmem:[%s506_s1] sm:$0x3f]   ;;  %350 = vmatprep.subr.bf16.mxu1 %v415_v0  ;;  %v45_v3 = vsel %vm43_vm0, 4294967295, %v416_v2  ;;  %vm417_vm2 = vmmov 0   ;;  %vm39_vm3 = vcmask 89088  }
   0x2   :  { %346 = vmatprep.mubr.msk.bf16.mxu0 %vm417_vm2, %v415_v0  ;;  %v26_v4 = vld [vmem:[%s505_s0] sm:$0xff]  ;;  %354 = vmatprep.mubr.msk.bf16.mxu1 %vm417_vm2, %v415_v0  ;;  %v46_v5 = vsel %vm44_vm1, %v45_v3, 0 }
   0x3   :  { %v48_v6 = vand.u32 %v382_v1, %v46_v5  ;;  %v27_v7 = vpack.c.bf16 %v26_v4, %v26_v4 }
   0x5   :  { %345 = vmatpush3.bf16.msra.mxu0 %v48_v6 }
   0x6   :  { %358 = vmatprep.subr.bf16.mxu0 %v415_v0 }
   0x8   :  { %347 = vmatmul.mubr.msk.bf16.vlgmr.msra.gmra.mrb[0].mxu0 %vm39_vm3, %v27_v7 }
   0x9   :  { %11 = vsyncpa [#allocation3], 0  ;;  %366 = vmatprep.mubr.msk.bf16.mxu0 %vm417_vm2, %v415_v0  ;;  %v383_v8 = vld [vmem:[%s507_s2] sm:$0xff]   ;;  %v384_v9 = vld [vmem:[%s507_s2 + $0x8] sm:$0xff]   ;;  %v30_v12 = vlaneseq  ;;  %vm112_vm4 = vcmask 261120   ;;  %vm194_vm5 = vcmask 523264  }
   0xa   :  { %351 = vmatpush3.bf16.msra.mxu1 %v383_v8  ;;  %v385_v10 = vld [vmem:[%s508_s3] sm:$0xff]   ;;  %v386_v11 = vld [vmem:[%s508_s3 + $0x8] sm:$0xff]   ;;  %v387_v24 = vld [vmem:[%s508_s3 + $0x10] sm:$0xff]   ;;  %s418_s14 = smov [#allocation2]  }
   0xb   :  { %352 = vmatprep.subr.bf16.mxu1 %v415_v0  ;;  %359 = vmatpush3.bf16.msra.mxu0 %v385_v10  ;;  %v31_v13 = vshrl.u32 %v30_v12, 7  ;;  %v25_v15 = vld [vmem:[%s510_s5] sm:$0xf]  ;;  %v388_v25 = vld [vmem:[%s508_s3 + $0x18] sm:$0xff]   ;;  %v390_v36 = vld [vmem:[%s509_s4 + $0x8] sm:$0xff]   ;;  %s310_s15 = sshll.u32 %s418_s14, 4  ;;  %s311_s15 = int_to_ptr.vmem [resolvable:$true] %s310_s15 }
   0xc   :  { %360 = vmatprep.subr.bf16.mxu0 %v415_v0  ;;  %v389_v26 = vld [vmem:[%s509_s4] sm:$0xff]   ;;  %s391_s4 = scalar_lea.vmem %s311_s15, 128  ;;  %p396_p1 = scmp.lt.s32.totalorder %s311_s15, %s311_s15 }
   0xd   :  { %v32_v14 = vsub.s32 0, %v31_v13  ;;  %v98_v27 = vsub.s32 1, %v31_v13  ;;  %v168_v37 = vsub.s32 2, %v31_v13  ;;  %v246_v46 = vsub.s32 3, %v31_v13  ;;  %p392_p0 = scmp.ne.s32.totalorder %s311_s15, %s391_s4  ;;  %p397_p2 = scmp.lt.s32.totalorder %s391_s4, %s391_s4 }
   0xe   :  { %353 = vmatpush3.bf16.msra.mxu1 %v384_v9 }
   0xf   :  { %370 = vmatprep.subr.bf16.mxu1 %v415_v0  ;;  %361 = vmatpush3.bf16.msra.mxu0 %v386_v11  ;;  %v33_v16 = vrot.slane %v25_v15, %v32_v14  ;;  %v99_v28 = vrot.slane %v25_v15, %v98_v27  ;;  %v169_v38 = vrot.slane %v25_v15, %v168_v37  ;;  %p398_p3 = por %p397_p2, %p396_p1 }
  0x10   :  { %362 = vmatprep.subr.bf16.mxu0 %v415_v0  ;;  %v247_v47 = vrot.slane %v25_v15, %v246_v46 }
  0x11   :  { %p399_p4 = pnand %p398_p3, %p392_p0 }
  0x13   :  { %363 = vmatpush3.bf16.msra.mxu0 %v387_v24 }
  0x14   :  { %364 = vmatprep.subr.bf16.mxu0 %v415_v0 }
  0x17   :  { %365 = vmatpush3.bf16.msra.mxu0 %v388_v25 }
  0xdb   :  { %v84_v17 = vpop.f32.mrb[0].mxu0 }
  0xdc   :  { %v85_v18 = vadd.f32 %v84_v17, %v33_v16  ;;  %v348_v19 = vpop.f32.mrb[1].mxu0 }
  0xdd   :  { %v87_v20 = vpop.f32.mrb[2].mxu0 }
  0xde   :  { %v90_v21 = vmax.f32 %v85_v18, 0.0  ;;  %v349_v22 = vpop.f32.mrb[3].mxu0 }
  0xe0   :  { %v91_v23 = vpack.c.bf16 %v90_v21, %v90_v21 }
  0xe2   :  { %355 = vmatmul.mubr.msk.bf16.vlgmr.msra.gmra.mrb[0].mxu1 %vm112_vm4, %v91_v23 }
  0xe3   :  { %374 = vmatprep.mubr.msk.bf16.mxu1 %vm417_vm2, %v415_v0  ;;  %371 = vmatpush3.bf16.msra.mxu1 %v389_v26 }
  0xe4   :  { %372 = vmatprep.subr.bf16.mxu1 %v415_v0 }
  0xe7   :  { %373 = vmatpush3.bf16.msra.mxu1 %v390_v36 }
 0x1b5   :  { %v150_v29 = vpop.f32.mrb[0].mxu1 }
 0x1b6   :  { %v151_v30 = vadd.f32 %v150_v29, %v99_v28  ;;  %v356_v31 = vpop.f32.mrb[1].mxu1 }
 0x1b7   :  { %v153_v32 = vpop.f32.mrb[2].mxu1 }
 0x1b8   :  { %v156_v33 = vmax.f32 %v151_v30, 0.0  ;;  %v357_v34 = vpop.f32.mrb[3].mxu1 }
 0x1ba   :  { %v157_v35 = vpack.c.bf16 %v156_v33, %v156_v33 }
 0x1bc   :  { %367 = vmatmul.mubr.msk.bf16.vlgmr.msra.gmra.mrb[4].mxu0 %vm194_vm5, %v157_v35 }
 0x28f   :  { %v232_v39 = vpop.f32.mrb[4].mxu0 }
 0x290   :  { %v233_v40 = vadd.f32 %v232_v39, %v169_v38  ;;  %v368_v41 = vpop.f32.mrb[5].mxu0 }
 0x291   :  { %v235_v42 = vpop.f32.mrb[6].mxu0 }
 0x292   :  { %v238_v43 = vmax.f32 %v233_v40, 0.0  ;;  %v369_v44 = vpop.f32.mrb[7].mxu0 }
 0x294   :  { %v239_v45 = vpack.c.bf16 %v238_v43, %v238_v43 }
 0x296   :  { %375 = vmatmul.mubr.msk.bf16.vlgmr.msra.gmra.mrb[4].mxu1 %vm112_vm4, %v239_v45 }
 0x369   :  { %v297_v48 = vpop.f32.mrb[4].mxu1 }
 0x36a   :  { %v298_v49 = vadd.f32 %v297_v48, %v247_v47  ;;  %v376_v50 = vpop.f32.mrb[5].mxu1 }
 0x36b   :  { %v300_v51 = vpop.f32.mrb[6].mxu1 }
 0x36c   :  { %303 = vst [vmem:[#allocation2] sm:$0xff] %v298_v49  ;;  %v377_v52 = vpop.f32.mrb[7].mxu1 }
 0x36d   :  { %402 = shalt.err (!%p399_p4)
}
 0x36e   :  { %s403_s18 = scalar_lea.hbm %s511_s6, 128 }
 0x36f   :  { %p404_p5 = scmp.ne.s32.totalorder %s511_s6, %s403_s18  ;;  %p407_p6 = scmp.lt.u32.totalorder %s403_s18, %s511_s6 }
 0x371   :  { %p409_p7 = pnand %p407_p6, %p404_p5 }
 0x373   :  { %412 = shalt.err (!%p409_p7)
}
 0x374   :  { %313 = dma.vmem_to_hbm [thread:$0]  %s311_s15, 128, %s511_s6, [#allocation3]  }
 0x375   :  { %413 = dma.done.wait [#allocation3], 128  }
 0x376   :  { %414 = vsyncadd [#allocation3], 4294967168 }
 0x377   :  { %317 = vsyncpa [#allocation3], 1 }

</bundles_post_ra>
